<compile_context>
chip_gen: v6e
topology: v6e:2x2x1
jax: 0.10.0
libtpu: 0.0.40
codegen_flags: <defaults>
</compile_context>

<pallas_src>
import functools

import jax
import jax.numpy as jnp
from jax import lax
from jax.experimental import pallas as pl
from jax.experimental.pallas import tpu as pltpu


def _round_up(n, m):
    return (n + m - 1) // m * m


def _gelu_tanh(x):
    # tanh-form GELU (|err| vs exact erf GELU < 1e-3); tanh runs on the EUP slot.
    c = 0.7978845608028654  # sqrt(2/pi)
    return 0.5 * x * (1.0 + jnp.tanh(c * (x + 0.044715 * (x * x * x))))


def _residual_block_kernel(half_len,
                           x_ref, w1r_ref, w2_ref,
                           s1_ref, t1_ref, s2_ref, t2_ref, sr_ref, tr_ref,
                           out_ref):
    """One grid step = `seqs_per_tile` whole sequences.

    x_ref : (Rh, 2*Cin) bf16 -- row r = [channels of position 2r | channels of position 2r+1].
    out_ref: (Rh, Cout_p) bf16 -- pooled row r = max over positions 2r, 2r+1.
    """
    x = x_ref[...]                                   # bf16; never expanded to f32 wholesale
    rh = x.shape[0]
    cin = x.shape[1] // 2
    cout_p = out_ref.shape[1]

    # position of each row inside its own sequence (tiles always hold whole sequences)
    pos = lax.broadcasted_iota(jnp.int32, (rh, 1), 0) % half_len
    mask_prev = pos >= 1                 # hoisted: reused by both convs
    mask_next = pos <= half_len - 2

    def shift_prev(a32):
        # a[r-1] within each sequence; zero at pos==0 (conv zero padding; also stops the cyclic roll
        # from leaking across sequence boundaries inside the tile).  Roll/select stay in f32 (proven
        # lowering path, native VALU on every TPU gen); result cast to bf16 for the matmul operand.
        return jnp.where(mask_prev, pltpu.roll(a32, shift=1, axis=0), 0.0).astype(jnp.bfloat16)

    def shift_next(a32):
        # a[r+1] within each sequence; zero at pos == half_len - 1.
        return jnp.where(mask_next, pltpu.roll(a32, shift=rh - 1, axis=0), 0.0).astype(jnp.bfloat16)

    s1 = s1_ref[...]; t1 = t1_ref[...]
    s2 = s2_ref[...]; t2 = t2_ref[...]
    sr = sr_ref[...]; tr = tr_ref[...]

    xe = x[:, :cin]                                  # even positions  x[2r]
    xo = x[:, cin:]                                  # odd  positions  x[2r+1]
    prev_xo = shift_prev(xo.astype(jnp.float32))     # x[2r-1]
    next_xe = shift_next(xe.astype(jnp.float32))     # x[2r+2]

    # conv1 (3-tap, stride 1, pad 1) + residual 1x1 conv, both parities stacked along rows so the RHS
    # is pushed through the MXU once.  Row blocks of every (2*Rh, .) tensor = [even outputs ; odd].
    #   even p=2r  : taps (x[2r-1], x[2r],   x[2r+1]) = (prev_xo, xe, xo)
    #   odd  p=2r+1: taps (x[2r],   x[2r+1], x[2r+2]) = (xe,      xo, next_xe)
    # The residual weight sits in the extra Cout_p output columns of the centre tap, so a single matmul
    # yields conv1 and the residual together (doubles MXU N to 2*Cout_p on v6e/v7x).
    if len(w1r_ref.shape) == 2:
        # Cin % 128 == 0 (chained blocks): tap pieces are lane-aligned -> one wide-K (K=3*Cin) matmul.
        ext1 = jnp.concatenate(
            [jnp.concatenate([prev_xo, x], axis=1),           # [prev | cur | next] for even rows
             jnp.concatenate([x, next_xe], axis=1)], axis=0)  # [prev | cur | next] for odd  rows
        h = jnp.dot(ext1, w1r_ref[...], preferred_element_type=jnp.float32)
    else:
        # small-Cin first block: avoid unaligned lane concats; three tiny-K matmuls instead (MXU time
        # is negligible here -- the win is the unpadded HBM activation).  w1r_ref is (3, Cin, 2*Cout_p).
        prv = jnp.concatenate([prev_xo, xe], axis=0)          # x[p-1] for (even ; odd)
        cur = jnp.concatenate([xe, xo], axis=0)               # x[p]
        nxt = jnp.concatenate([xo, next_xe], axis=0)          # x[p+1]
        h = (jnp.dot(cur, w1r_ref[1], preferred_element_type=jnp.float32)
             + jnp.dot(prv, w1r_ref[0], preferred_element_type=jnp.float32)
             + jnp.dot(nxt, w1r_ref[2], preferred_element_type=jnp.float32))

    # bn1 -> GELU -> dropout(identity); bn_residual on the folded residual columns.
    # TODO(synk): train-mode Dropout / batch-statistics BatchNorm not implemented (inference only).
    res = h[:, cout_p:] * sr + tr                    # (2*Rh, Cout_p) f32
    h1 = _gelu_tanh(h[:, :cout_p] * s1 + t1)         # (2*Rh, Cout_p) f32

    h1e32 = h1[:rh]
    h1o32 = h1[rh:]
    h1e = h1e32.astype(jnp.bfloat16)
    h1o = h1o32.astype(jnp.bfloat16)
    prev_h1o = shift_prev(h1o32)
    next_h1e = shift_next(h1e32)

    # conv2: Cout_p is always a multiple of 128 -> aligned wide-K concat, one matmul for both parities.
    ext2 = jnp.concatenate(
        [jnp.concatenate([prev_h1o, h1e, h1o], axis=1),
         jnp.concatenate([h1e, h1o, next_h1e], axis=1)], axis=0)   # (2*Rh, 3*Cout_p) bf16
    h2 = jnp.dot(ext2, w2_ref[...], preferred_element_type=jnp.float32)

    # bn2 -> +residual -> GELU -> MaxPool1d(2,2) == element-wise max of the two parity streams.
    h2 = _gelu_tanh(h2 * s2 + t2 + res)
    out_ref[...] = jnp.maximum(h2[:rh], h2[rh:]).astype(out_ref.dtype)


def _choose_seqs_per_tile(batch, rows_per_seq, target_rows):
    # Whole sequences per grid step; bf16 tiles need a sublane extent that is a multiple of 16
    # unless the tile covers the whole array.
    cands = [s for s in range(1, batch + 1)
             if batch % s == 0 and ((s * rows_per_seq) % 16 == 0 or s == batch)]
    fitting = [s for s in cands if s * rows_per_seq <= target_rows]
    s = max(fitting) if fitting else min(cands)
    # Keep >= 2 grid steps when possible so ("parallel",) can shard the batch across both
    # TensorCores on v7x (a single-step grid leaves one TC idle there).
    if s == batch and batch > 1:
        multi = [c for c in cands if c < batch]
        if multi:
            fit_multi = [c for c in multi if c * rows_per_seq <= target_rows]
            s = max(fit_multi) if fit_multi else max(multi)
    return s


def _default_row_target(cin, cout_p):
    # Big tiles amortise the ~0.35us per-grid-step overhead; cap so the in-kernel temporaries
    # (both parity streams stacked) stay <= ~14 MiB, sized against v7x's 64 MiB/TC VMEM.
    per_row_bytes = 12 * cin + 48 * cout_p + 256
    return int(max(128, min(1024, (14 * 1024 * 1024) // per_row_bytes)))


def _io_buffer_count():
    # v5e has the least HBM bandwidth -> deepen input/output pipelining to 3 buffers there only.
    try:
        kind = jax.devices()[0].device_kind.lower()
    except Exception:
        return 2
    return 3 if ("v5 lite" in kind or "v5e" in kind) else 2


def _io_block_spec(shape, index_map, nbuf):
    if nbuf != 2:
        try:
            return pl.BlockSpec(shape, index_map, pipeline_mode=pl.Buffered(nbuf))
        except (TypeError, AttributeError):
            pass
    return pl.BlockSpec(shape, index_map)


def residual_block_nlc(x_blc, params, *, row_tile_target=None, return_padded=False):
    """ResidualBlock forward on a channels-last (B, L, Cin) input -> (B, L//2, Cout).

    When chaining blocks (as ConvEncoder does) pass return_padded=True and feed the bf16
    (B, L//2, Cout_p) result straight back in: the packed even|odd layout the kernel consumes is a
    free row-major reshape of it, so no HBM repacking / slicing pass is paid between blocks.
    """
    B, L, Cin = x_blc.shape
    assert L % 2 == 0, "MaxPool1d(2,2) expects an even sequence length"
    Cout = params["w1"].shape[0]
    Cout_p = _round_up(Cout, 128)
    half = L // 2
    eps = 1e-5

    def fuse_bn(bias, gamma, beta, mean, var):
        s = gamma / jnp.sqrt(var + eps)
        t = (bias - mean) * s + beta
        s = jnp.pad(s, (0, Cout_p - Cout)).reshape(1, Cout_p).astype(jnp.float32)
        t = jnp.pad(t, (0, Cout_p - Cout)).reshape(1, Cout_p).astype(jnp.float32)
        return s, t

    s1, t1 = fuse_bn(params["b1"], params["g1"], params["beta1"], params["m1"], params["v1"])
    s2, t2 = fuse_bn(params["b2"], params["g2"], params["beta2"], params["m2"], params["v2"])
    sr, tr = fuse_bn(params["br"], params["gr"], params["betar"], params["mr"], params["vr"])

    # conv1 weight (Cout, Cin, 3) -> taps stacked over K (k = 0,1,2 <-> x[p-1], x[p], x[p+1]);
    # residual 1x1 weight folded into an extra Cout_p output-column block on the centre tap.
    w1t = jnp.pad(jnp.transpose(params["w1"], (2, 1, 0)),
                  ((0, 0), (0, 0), (0, Cout_p - Cout)))                    # (3, Cin, Cout_p)
    wrt = jnp.pad(jnp.transpose(params["wr"][:, :, 0], (1, 0)),
                  ((0, 0), (0, Cout_p - Cout)))                            # (Cin, Cout_p)
    res_cols = jnp.stack([jnp.zeros_like(wrt), wrt, jnp.zeros_like(wrt)], axis=0)
    w1r = jnp.concatenate([w1t, res_cols], axis=2).astype(jnp.bfloat16)    # (3, Cin, 2*Cout_p)
    cin_aligned = (Cin % 128 == 0)
    if cin_aligned:
        w1r = w1r.reshape(3 * Cin, 2 * Cout_p)      # single wide-K matmul layout

    # conv2 weight (Cout, Cout, 3) -> (3*Cout_p, Cout_p), taps stacked over K.
    w2s = jnp.pad(jnp.transpose(params["w2"], (2, 1, 0)),
                  ((0, 0), (0, Cout_p - Cout), (0, Cout_p - Cout)))
    w2s = w2s.reshape(3 * Cout_p, Cout_p).astype(jnp.bfloat16)

    # packed activation: row r of sequence b = [channels at pos 2r | channels at pos 2r+1]
    # -- a free reshape, no channel padding, no deinterleave pass.
    x_pack = x_blc.astype(jnp.bfloat16).reshape(B * half, 2 * Cin)

    if row_tile_target is None:
        row_tile_target = _default_row_target(Cin, Cout_p)
    seqs = _choose_seqs_per_tile(B, half, row_tile_target)
    rh_tile = seqs * half
    grid = (B // seqs,)

    row_map = lambda i: (i, 0)
    keep = lambda i: (0, 0)         # constant block index -> resident in VMEM across grid steps
    w1r_spec = (pl.BlockSpec(w1r.shape, keep) if cin_aligned
                else pl.BlockSpec(w1r.shape, lambda i: (0, 0, 0)))
    nbuf = _io_buffer_count()

    out_flat = pl.pallas_call(
        functools.partial(_residual_block_kernel, half),
        out_shape=jax.ShapeDtypeStruct((B * half, Cout_p), jnp.bfloat16),
        grid=grid,
        in_specs=[
            _io_block_spec((rh_tile, 2 * Cin), row_map, nbuf),   # packed activations
            w1r_spec,                                            # conv1 + residual fused weight
            pl.BlockSpec((3 * Cout_p, Cout_p), keep),            # conv2 stacked weight
            pl.BlockSpec((1, Cout_p), keep),                     # bn1 scale
            pl.BlockSpec((1, Cout_p), keep),                     # bn1 shift
            pl.BlockSpec((1, Cout_p), keep),                     # bn2 scale
            pl.BlockSpec((1, Cout_p), keep),                     # bn2 shift
            pl.BlockSpec((1, Cout_p), keep),                     # bn_residual scale
            pl.BlockSpec((1, Cout_p), keep),                     # bn_residual shift
        ],
        out_specs=_io_block_spec((rh_tile, Cout_p), row_map, nbuf),
        compiler_params=pltpu.CompilerParams(
            dimension_semantics=("parallel",),                   # batch axis -> v7x megacore sharding
            vmem_limit_bytes=48 * 1024 * 1024,                   # < v7x 64 MiB/TC budget
        ),
    )(x_pack, w1r, w2s, s1, t1, s2, t2, sr, tr)

    if return_padded:
        return out_flat.reshape(B, half, Cout_p)     # chained use: stays bf16, keeps zero padding
    return out_flat[:, :Cout].reshape(B, half, Cout)


def residual_block_forward(x_ncl, params, *, row_tile_target=None):
    """PyTorch-layout entry point: (B, Cin, L) -> (B, Cout, L//2)."""
    out_nlc = residual_block_nlc(jnp.transpose(x_ncl, (0, 2, 1)), params,
                                 row_tile_target=row_tile_target)
    return jnp.transpose(out_nlc, (0, 2, 1))


def reference_forward(x, p):
    """Pure-JAX reference with identical (inference) semantics, for validation."""
    eps = 1e-5

    def conv1d(a, w, b, pad):
        y = lax.conv_general_dilated(a, w, window_strides=(1,), padding=((pad, pad),),
                                     dimension_numbers=("NCH", "OIH", "NCH"),
                                     precision=lax.Precision.HIGHEST)
        return y + b[None, :, None]

    def bn(a, g, beta, m, v):
        return (a - m[None, :, None]) * (g / jnp.sqrt(v + eps))[None, :, None] + beta[None, :, None]

    gelu = lambda z: jax.nn.gelu(z, approximate=False)

    res = bn(conv1d(x, p["wr"], p["br"], 0), p["gr"], p["betar"], p["mr"], p["vr"])
    h = gelu(bn(conv1d(x, p["w1"], p["b1"], 1), p["g1"], p["beta1"], p["m1"], p["v1"]))
    h = bn(conv1d(h, p["w2"], p["b2"], 1), p["g2"], p["beta2"], p["m2"], p["v2"])
    h = gelu(h + res)
    Bh, Ch, Lh = h.shape
    return jnp.max(h.reshape(Bh, Ch, Lh // 2, 2), axis=-1)


if __name__ == "__main__":
    def make_params(key, cin, cout):
        ks = jax.random.split(key, 20)

        def u(k, shape, fan_in):
            b = float(fan_in) ** -0.5
            return jax.random.uniform(k, shape, jnp.float32, -b, b)

        return {
            "w1": u(ks[0], (cout, cin, 3), 3 * cin), "b1": u(ks[1], (cout,), 3 * cin),
            "w2": u(ks[2], (cout, cout, 3), 3 * cout), "b2": u(ks[3], (cout,), 3 * cout),
            "wr": u(ks[4], (cout, cin, 1), cin), "br": u(ks[5], (cout,), cin),
            "g1": 1.0 + u(ks[6], (cout,), 100), "beta1": u(ks[7], (cout,), 100),
            "m1": u(ks[8], (cout,), 100),
            "v1": 1.0 + jax.random.uniform(ks[9], (cout,), jnp.float32, 0.0, 0.2),
            "g2": 1.0 + u(ks[10], (cout,), 100), "beta2": u(ks[11], (cout,), 100),
            "m2": u(ks[12], (cout,), 100),
            "v2": 1.0 + jax.random.uniform(ks[13], (cout,), jnp.float32, 0.0, 0.2),
            "gr": 1.0 + u(ks[14], (cout,), 100), "betar": u(ks[15], (cout,), 100),
            "mr": u(ks[16], (cout,), 100),
            "vr": 1.0 + jax.random.uniform(ks[17], (cout,), jnp.float32, 0.0, 0.2),
        }

    key = jax.random.PRNGKey(0)
    cases = [
        # (B, Cin, Cout, L, row_tile_target)
        (4, 4, 8, 16, 16),      # tiny-Cin first-block path; small tile target forces a 2-step grid
        (2, 128, 16, 16, None),  # lane-aligned Cin -> single wide-K conv1 matmul (chained-block path)
    ]
    for idx, (B, Cin, Cout, L, tile) in enumerate(cases):
        key, kp, kx = jax.random.split(key, 3)
        params = make_params(kp, Cin, Cout)
        x = jax.random.normal(kx, (B, Cin, L), jnp.float32)   # PyTorch NCL input

        fwd = jax.jit(functools.partial(residual_block_forward, row_tile_target=tile))
        out = jax.block_until_ready(fwd(x, params))
        assert out.shape == (B, Cout, L // 2), out.shape

        ref = reference_forward(x, params)
        max_err = float(jnp.max(jnp.abs(out.astype(jnp.float32) - ref)))
        if max_err > 5e-2:
            raise AssertionError(f"case {idx}: kernel/reference mismatch, max abs err = {max_err}")

    print("KERNEL_OK")
</pallas_src>

<mosaic_0001>
module attributes {stable_mosaic.version = 11 : i64} {
  func.func @_residual_block_kernel(%arg0: i32, %arg1: memref<16x8xbf16, #tpu.memory_space<vmem>>, %arg2: memref<3x4x256xbf16, #tpu.memory_space<vmem>>, %arg3: memref<384x128xbf16, #tpu.memory_space<vmem>>, %arg4: memref<1x128xf32, #tpu.memory_space<vmem>>, %arg5: memref<1x128xf32, #tpu.memory_space<vmem>>, %arg6: memref<1x128xf32, #tpu.memory_space<vmem>>, %arg7: memref<1x128xf32, #tpu.memory_space<vmem>>, %arg8: memref<1x128xf32, #tpu.memory_space<vmem>>, %arg9: memref<1x128xf32, #tpu.memory_space<vmem>>, %arg10: memref<16x128xbf16, #tpu.memory_space<vmem>>) attributes {dimension_semantics = [#tpu.dimension_semantics<parallel>], iteration_bounds = array<i64: 2>, scalar_prefetch = 0 : i64, scratch_operands = 0 : i64, tpu.core_type = #tpu.core_type<tc>, window_params = [{transform_indices = @transform_0, window_bounds = array<i64: 16, 8>}, {pipeline_mode = #tpu.pipeline_mode<synchronous>, transform_indices = @transform_1, window_bounds = array<i64: 3, 4, 256>}, {pipeline_mode = #tpu.pipeline_mode<synchronous>, transform_indices = @transform_2, window_bounds = array<i64: 384, 128>}, {pipeline_mode = #tpu.pipeline_mode<synchronous>, transform_indices = @transform_3, window_bounds = array<i64: 1, 128>}, {pipeline_mode = #tpu.pipeline_mode<synchronous>, transform_indices = @transform_4, window_bounds = array<i64: 1, 128>}, {pipeline_mode = #tpu.pipeline_mode<synchronous>, transform_indices = @transform_5, window_bounds = array<i64: 1, 128>}, {pipeline_mode = #tpu.pipeline_mode<synchronous>, transform_indices = @transform_6, window_bounds = array<i64: 1, 128>}, {pipeline_mode = #tpu.pipeline_mode<synchronous>, transform_indices = @transform_7, window_bounds = array<i64: 1, 128>}, {pipeline_mode = #tpu.pipeline_mode<synchronous>, transform_indices = @transform_8, window_bounds = array<i64: 1, 128>}, {transform_indices = @transform_9, window_bounds = array<i64: 16, 128>}]} {
    %c0 = arith.constant 0 : index
    %c0_0 = arith.constant 0 : index
    %0 = vector.load %arg1[%c0, %c0_0] : memref<16x8xbf16, #tpu.memory_space<vmem>>, vector<16x8xbf16>
    %1 = tpu.iota {dimensions = array<i32: 0>} : vector<16x1xi32>
    %c8_i32 = arith.constant 8 : i32
    %c0_i32 = arith.constant 0 : i32
    %2 = arith.cmpi eq, %c8_i32, %c0_i32 : i32
    %c1_i32 = arith.constant 1 : i32
    %3 = arith.select %2, %c1_i32, %c8_i32 : i32
    %4 = vector.broadcast %3 : i32 to vector<16x1xi32>
    %5 = arith.remsi %1, %4 : vector<16x1xi32>
    %c0_i32_1 = arith.constant 0 : i32
    %6 = vector.broadcast %c0_i32_1 : i32 to vector<16x1xi32>
    %7 = arith.cmpi ne, %5, %6 : vector<16x1xi32>
    %c0_i32_2 = arith.constant 0 : i32
    %8 = vector.broadcast %c0_i32_2 : i32 to vector<16x1xi32>
    %9 = arith.cmpi slt, %5, %8 : vector<16x1xi32>
    %c0_i32_3 = arith.constant 0 : i32
    %10 = arith.cmpi slt, %3, %c0_i32_3 : i32
    %11 = vector.broadcast %10 : i1 to vector<16x1xi1>
    %12 = vector.broadcast %11 : vector<16x1xi1> to vector<16x1xi1>
    %13 = arith.xori %9, %12 : vector<16x1xi1>
    %14 = arith.andi %13, %7 : vector<16x1xi1>
    %15 = vector.broadcast %3 : i32 to vector<16x1xi32>
    %16 = arith.addi %5, %15 : vector<16x1xi32>
    %17 = arith.select %14, %16, %5 : vector<16x1xi1>, vector<16x1xi32>
    %c1_i32_4 = arith.constant 1 : i32
    %18 = vector.broadcast %c1_i32_4 : i32 to vector<16x1xi32>
    %19 = arith.cmpi sge, %17, %18 : vector<16x1xi32>
    %c6_i32 = arith.constant 6 : i32
    %20 = vector.broadcast %c6_i32 : i32 to vector<16x1xi32>
    %21 = arith.cmpi sle, %17, %20 : vector<16x1xi32>
    %c0_5 = arith.constant 0 : index
    %c0_6 = arith.constant 0 : index
    %22 = vector.load %arg4[%c0_5, %c0_6] : memref<1x128xf32, #tpu.memory_space<vmem>>, vector<1x128xf32>
    %c0_7 = arith.constant 0 : index
    %c0_8 = arith.constant 0 : index
    %23 = vector.load %arg5[%c0_7, %c0_8] : memref<1x128xf32, #tpu.memory_space<vmem>>, vector<1x128xf32>
    %c0_9 = arith.constant 0 : index
    %c0_10 = arith.constant 0 : index
    %24 = vector.load %arg6[%c0_9, %c0_10] : memref<1x128xf32, #tpu.memory_space<vmem>>, vector<1x128xf32>
    %c0_11 = arith.constant 0 : index
    %c0_12 = arith.constant 0 : index
    %25 = vector.load %arg7[%c0_11, %c0_12] : memref<1x128xf32, #tpu.memory_space<vmem>>, vector<1x128xf32>
    %c0_13 = arith.constant 0 : index
    %c0_14 = arith.constant 0 : index
    %26 = vector.load %arg8[%c0_13, %c0_14] : memref<1x128xf32, #tpu.memory_space<vmem>>, vector<1x128xf32>
    %c0_15 = arith.constant 0 : index
    %c0_16 = arith.constant 0 : index
    %27 = vector.load %arg9[%c0_15, %c0_16] : memref<1x128xf32, #tpu.memory_space<vmem>>, vector<1x128xf32>
    %28 = vector.extract_strided_slice %0 {offsets = [0, 0], sizes = [16, 4], strides = [1, 1]} : vector<16x8xbf16> to vector<16x4xbf16>
    %29 = vector.extract_strided_slice %0 {offsets = [0, 4], sizes = [16, 4], strides = [1, 1]} : vector<16x8xbf16> to vector<16x4xbf16>
    %30 = arith.extf %29 : vector<16x4xbf16> to vector<16x4xf32>
    %c1_i32_17 = arith.constant 1 : i32
    %31 = tpu.dynamic_rotate %30 by %c1_i32_17 dim 0 : vector<16x4xf32>, i32 -> vector<16x4xf32>
    %cst = arith.constant 0.000000e+00 : f32
    %32 = vector.shape_cast %19 : vector<16x1xi1> to vector<16x1xi1>
    %33 = vector.broadcast %32 : vector<16x1xi1> to vector<16x4xi1>
    %34 = vector.broadcast %cst : f32 to vector<16x4xf32>
    %35 = arith.select %33, %31, %34 : vector<16x4xi1>, vector<16x4xf32>
    %36 = arith.truncf %35 : vector<16x4xf32> to vector<16x4xbf16>
    %37 = arith.extf %28 : vector<16x4xbf16> to vector<16x4xf32>
    %c15_i32 = arith.constant 15 : i32
    %38 = tpu.dynamic_rotate %37 by %c15_i32 dim 0 : vector<16x4xf32>, i32 -> vector<16x4xf32>
    %cst_18 = arith.constant 0.000000e+00 : f32
    %39 = vector.shape_cast %21 : vector<16x1xi1> to vector<16x1xi1>
    %40 = vector.broadcast %39 : vector<16x1xi1> to vector<16x4xi1>
    %41 = vector.broadcast %cst_18 : f32 to vector<16x4xf32>
    %42 = arith.select %40, %38, %41 : vector<16x4xi1>, vector<16x4xf32>
    %43 = arith.truncf %42 : vector<16x4xf32> to vector<16x4xbf16>
    %44 = tpu.concatenate %36, %28 in 0 : vector<16x4xbf16>, vector<16x4xbf16> -> vector<32x4xbf16>
    %45 = tpu.concatenate %28, %29 in 0 : vector<16x4xbf16>, vector<16x4xbf16> -> vector<32x4xbf16>
    %46 = tpu.concatenate %29, %43 in 0 : vector<16x4xbf16>, vector<16x4xbf16> -> vector<32x4xbf16>
    %c1 = arith.constant 1 : index
    %c0_19 = arith.constant 0 : index
    %c0_20 = arith.constant 0 : index
    %47 = vector.load %arg2[%c1, %c0_19, %c0_20] : memref<3x4x256xbf16, #tpu.memory_space<vmem>>, vector<1x4x256xbf16>
    %48 = vector.shape_cast %47 : vector<1x4x256xbf16> to vector<4x256xbf16>
    %cst_21 = arith.constant dense<0.000000e+00> : vector<32x256xf32>
    %49 = tpu.matmul %45, %48, %cst_21 {dimension_numbers = #tpu.dot_dimension_numbers<[1], [0], [0], [1], [0, 0, 1, 1], [], []>} : vector<32x4xbf16>, vector<4x256xbf16>, vector<32x256xf32> -> vector<32x256xf32>
    %c0_22 = arith.constant 0 : index
    %c0_23 = arith.constant 0 : index
    %c0_24 = arith.constant 0 : index
    %50 = vector.load %arg2[%c0_22, %c0_23, %c0_24] : memref<3x4x256xbf16, #tpu.memory_space<vmem>>, vector<1x4x256xbf16>
    %51 = vector.shape_cast %50 : vector<1x4x256xbf16> to vector<4x256xbf16>
    %cst_25 = arith.constant dense<0.000000e+00> : vector<32x256xf32>
    %52 = tpu.matmul %44, %51, %cst_25 {dimension_numbers = #tpu.dot_dimension_numbers<[1], [0], [0], [1], [0, 0, 1, 1], [], []>} : vector<32x4xbf16>, vector<4x256xbf16>, vector<32x256xf32> -> vector<32x256xf32>
    %53 = arith.addf %49, %52 : vector<32x256xf32>
    %c2 = arith.constant 2 : index
    %c0_26 = arith.constant 0 : index
    %c0_27 = arith.constant 0 : index
    %54 = vector.load %arg2[%c2, %c0_26, %c0_27] : memref<3x4x256xbf16, #tpu.memory_space<vmem>>, vector<1x4x256xbf16>
    %55 = vector.shape_cast %54 : vector<1x4x256xbf16> to vector<4x256xbf16>
    %cst_28 = arith.constant dense<0.000000e+00> : vector<32x256xf32>
    %56 = tpu.matmul %46, %55, %cst_28 {dimension_numbers = #tpu.dot_dimension_numbers<[1], [0], [0], [1], [0, 0, 1, 1], [], []>} : vector<32x4xbf16>, vector<4x256xbf16>, vector<32x256xf32> -> vector<32x256xf32>
    %57 = arith.addf %53, %56 : vector<32x256xf32>
    %58 = vector.extract_strided_slice %57 {offsets = [0, 128], sizes = [32, 128], strides = [1, 1]} : vector<32x256xf32> to vector<32x128xf32>
    %59 = vector.broadcast %26 : vector<1x128xf32> to vector<32x128xf32>
    %60 = arith.mulf %58, %59 : vector<32x128xf32>
    %61 = vector.broadcast %27 : vector<1x128xf32> to vector<32x128xf32>
    %62 = arith.addf %60, %61 : vector<32x128xf32>
    %63 = vector.extract_strided_slice %57 {offsets = [0, 0], sizes = [32, 128], strides = [1, 1]} : vector<32x256xf32> to vector<32x128xf32>
    %64 = vector.broadcast %22 : vector<1x128xf32> to vector<32x128xf32>
    %65 = arith.mulf %63, %64 : vector<32x128xf32>
    %66 = vector.broadcast %23 : vector<1x128xf32> to vector<32x128xf32>
    %67 = arith.addf %65, %66 : vector<32x128xf32>
    %cst_29 = arith.constant 5.000000e-01 : f32
    %68 = vector.broadcast %cst_29 : f32 to vector<32x128xf32>
    %69 = arith.mulf %68, %67 : vector<32x128xf32>
    %70 = arith.mulf %67, %67 : vector<32x128xf32>
    %71 = arith.mulf %70, %67 : vector<32x128xf32>
    %cst_30 = arith.constant 4.471500e-02 : f32
    %72 = vector.broadcast %cst_30 : f32 to vector<32x128xf32>
    %73 = arith.mulf %72, %71 : vector<32x128xf32>
    %74 = arith.addf %67, %73 : vector<32x128xf32>
    %cst_31 = arith.constant 0.797884583 : f32
    %75 = vector.broadcast %cst_31 : f32 to vector<32x128xf32>
    %76 = arith.mulf %75, %74 : vector<32x128xf32>
    %77 = math.tanh %76 : vector<32x128xf32>
    %cst_32 = arith.constant 1.000000e+00 : f32
    %78 = vector.broadcast %cst_32 : f32 to vector<32x128xf32>
    %79 = arith.addf %78, %77 : vector<32x128xf32>
    %80 = arith.mulf %69, %79 : vector<32x128xf32>
    %81 = vector.extract_strided_slice %80 {offsets = [0, 0], sizes = [16, 128], strides = [1, 1]} : vector<32x128xf32> to vector<16x128xf32>
    %82 = vector.extract_strided_slice %80 {offsets = [16, 0], sizes = [16, 128], strides = [1, 1]} : vector<32x128xf32> to vector<16x128xf32>
    %83 = arith.truncf %81 : vector<16x128xf32> to vector<16x128xbf16>
    %84 = arith.truncf %82 : vector<16x128xf32> to vector<16x128xbf16>
    %c1_i32_33 = arith.constant 1 : i32
    %85 = tpu.dynamic_rotate %82 by %c1_i32_33 dim 0 : vector<16x128xf32>, i32 -> vector<16x128xf32>
    %cst_34 = arith.constant 0.000000e+00 : f32
    %86 = vector.shape_cast %19 : vector<16x1xi1> to vector<16x1xi1>
    %87 = vector.broadcast %86 : vector<16x1xi1> to vector<16x128xi1>
    %88 = vector.broadcast %cst_34 : f32 to vector<16x128xf32>
    %89 = arith.select %87, %85, %88 : vector<16x128xi1>, vector<16x128xf32>
    %90 = arith.truncf %89 : vector<16x128xf32> to vector<16x128xbf16>
    %c15_i32_35 = arith.constant 15 : i32
    %91 = tpu.dynamic_rotate %81 by %c15_i32_35 dim 0 : vector<16x128xf32>, i32 -> vector<16x128xf32>
    %cst_36 = arith.constant 0.000000e+00 : f32
    %92 = vector.shape_cast %21 : vector<16x1xi1> to vector<16x1xi1>
    %93 = vector.broadcast %92 : vector<16x1xi1> to vector<16x128xi1>
    %94 = vector.broadcast %cst_36 : f32 to vector<16x128xf32>
    %95 = arith.select %93, %91, %94 : vector<16x128xi1>, vector<16x128xf32>
    %96 = arith.truncf %95 : vector<16x128xf32> to vector<16x128xbf16>
    %97 = tpu.concatenate %90, %83, %84 in 1 : vector<16x128xbf16>, vector<16x128xbf16>, vector<16x128xbf16> -> vector<16x384xbf16>
    %98 = tpu.concatenate %83, %84, %96 in 1 : vector<16x128xbf16>, vector<16x128xbf16>, vector<16x128xbf16> -> vector<16x384xbf16>
    %99 = tpu.concatenate %97, %98 in 0 : vector<16x384xbf16>, vector<16x384xbf16> -> vector<32x384xbf16>
    %c0_37 = arith.constant 0 : index
    %c0_38 = arith.constant 0 : index
    %100 = vector.load %arg3[%c0_37, %c0_38] : memref<384x128xbf16, #tpu.memory_space<vmem>>, vector<384x128xbf16>
    %cst_39 = arith.constant dense<0.000000e+00> : vector<32x128xf32>
    %101 = tpu.matmul %99, %100, %cst_39 {dimension_numbers = #tpu.dot_dimension_numbers<[1], [0], [0], [1], [0, 0, 1, 1], [], []>} : vector<32x384xbf16>, vector<384x128xbf16>, vector<32x128xf32> -> vector<32x128xf32>
    %102 = vector.broadcast %24 : vector<1x128xf32> to vector<32x128xf32>
    %103 = arith.mulf %101, %102 : vector<32x128xf32>
    %104 = vector.broadcast %25 : vector<1x128xf32> to vector<32x128xf32>
    %105 = arith.addf %103, %104 : vector<32x128xf32>
    %106 = arith.addf %105, %62 : vector<32x128xf32>
    %cst_40 = arith.constant 5.000000e-01 : f32
    %107 = vector.broadcast %cst_40 : f32 to vector<32x128xf32>
    %108 = arith.mulf %107, %106 : vector<32x128xf32>
    %109 = arith.mulf %106, %106 : vector<32x128xf32>
    %110 = arith.mulf %109, %106 : vector<32x128xf32>
    %cst_41 = arith.constant 4.471500e-02 : f32
    %111 = vector.broadcast %cst_41 : f32 to vector<32x128xf32>
    %112 = arith.mulf %111, %110 : vector<32x128xf32>
    %113 = arith.addf %106, %112 : vector<32x128xf32>
    %cst_42 = arith.constant 0.797884583 : f32
    %114 = vector.broadcast %cst_42 : f32 to vector<32x128xf32>
    %115 = arith.mulf %114, %113 : vector<32x128xf32>
    %116 = math.tanh %115 : vector<32x128xf32>
    %cst_43 = arith.constant 1.000000e+00 : f32
    %117 = vector.broadcast %cst_43 : f32 to vector<32x128xf32>
    %118 = arith.addf %117, %116 : vector<32x128xf32>
    %119 = arith.mulf %108, %118 : vector<32x128xf32>
    %120 = vector.extract_strided_slice %119 {offsets = [0, 0], sizes = [16, 128], strides = [1, 1]} : vector<32x128xf32> to vector<16x128xf32>
    %121 = vector.extract_strided_slice %119 {offsets = [16, 0], sizes = [16, 128], strides = [1, 1]} : vector<32x128xf32> to vector<16x128xf32>
    %122 = arith.maximumf %120, %121 : vector<16x128xf32>
    %123 = arith.truncf %122 : vector<16x128xf32> to vector<16x128xbf16>
    %c0_44 = arith.constant 0 : index
    %c0_45 = arith.constant 0 : index
    %124 = vector.load %arg10[%c0_44, %c0_45] : memref<16x128xbf16, #tpu.memory_space<vmem>>, vector<16x128xbf16>
    tpu.vector_store %arg10[%c0_44, %c0_45], %123 {strides = array<i32>} : memref<16x128xbf16, #tpu.memory_space<vmem>>, vector<16x128xbf16>,
    return
  }
  func.func @transform_0(%arg0: i32) -> (i32, i32) {
    %c0_i32 = arith.constant 0 : i32
    %c0_i32_0 = arith.constant 0 : i32
    return %arg0, %c0_i32 : i32, i32
  }
  func.func @transform_1(%arg0: i32) -> (i32, i32, i32) {
    %c0_i32 = arith.constant 0 : i32
    %c0_i32_0 = arith.constant 0 : i32
    %c0_i32_1 = arith.constant 0 : i32
    %c0_i32_2 = arith.constant 0 : i32
    return %c0_i32, %c0_i32_0, %c0_i32_1 : i32, i32, i32
  }
  func.func @transform_2(%arg0: i32) -> (i32, i32) {
    %c0_i32 = arith.constant 0 : i32
    %c0_i32_0 = arith.constant 0 : i32
    %c0_i32_1 = arith.constant 0 : i32
    return %c0_i32, %c0_i32_0 : i32, i32
  }
  func.func @transform_3(%arg0: i32) -> (i32, i32) {
    %c0_i32 = arith.constant 0 : i32
    %c0_i32_0 = arith.constant 0 : i32
    %c0_i32_1 = arith.constant 0 : i32
    return %c0_i32, %c0_i32_0 : i32, i32
  }
  func.func @transform_4(%arg0: i32) -> (i32, i32) {
    %c0_i32 = arith.constant 0 : i32
    %c0_i32_0 = arith.constant 0 : i32
    %c0_i32_1 = arith.constant 0 : i32
    return %c0_i32, %c0_i32_0 : i32, i32
  }
  func.func @transform_5(%arg0: i32) -> (i32, i32) {
    %c0_i32 = arith.constant 0 : i32
    %c0_i32_0 = arith.constant 0 : i32
    %c0_i32_1 = arith.constant 0 : i32
    return %c0_i32, %c0_i32_0 : i32, i32
  }
  func.func @transform_6(%arg0: i32) -> (i32, i32) {
    %c0_i32 = arith.constant 0 : i32
    %c0_i32_0 = arith.constant 0 : i32
    %c0_i32_1 = arith.constant 0 : i32
    return %c0_i32, %c0_i32_0 : i32, i32
  }
  func.func @transform_7(%arg0: i32) -> (i32, i32) {
    %c0_i32 = arith.constant 0 : i32
    %c0_i32_0 = arith.constant 0 : i32
    %c0_i32_1 = arith.constant 0 : i32
    return %c0_i32, %c0_i32_0 : i32, i32
  }
  func.func @transform_8(%arg0: i32) -> (i32, i32) {
    %c0_i32 = arith.constant 0 : i32
    %c0_i32_0 = arith.constant 0 : i32
    %c0_i32_1 = arith.constant 0 : i32
    return %c0_i32, %c0_i32_0 : i32, i32
  }
  func.func @transform_9(%arg0: i32) -> (i32, i32) {
    %c0_i32 = arith.constant 0 : i32
    %c0_i32_0 = arith.constant 0 : i32
    return %arg0, %c0_i32 : i32, i32
  }
}

</mosaic_0001>

<bundles_post_ra>
// kernel: residual_block_forward.1
= control target key start
LH: loop header
LB: loop body
LE: loop exit
PB: predicated region body
PF: predicated region fallthrough
CT: control target
= control target key end

     0   :  { %s1411_s30 = smov 0   ;;  %s1623_s0 = inlined_call_operand.vmem [shape: bf16[32,8], index: 0, kind: input, shape index: {}]   ;;  %s1624_s1 = inlined_call_operand.vmem [shape: bf16[3,4,256], index: 1, kind: input, shape index: {}]   ;;  %s1625_s2 = inlined_call_operand.vmem [shape: bf16[384,128], index: 2, kind: input, shape index: {}]   ;;  %s1626_s3 = inlined_call_operand.vmem [shape: f32[1,128], index: 3, kind: input, shape index: {}]   ;;  %s1627_s4 = inlined_call_operand.vmem [shape: f32[1,128], index: 4, kind: input, shape index: {}]   ;;  %s1628_s5 = inlined_call_operand.vmem [shape: f32[1,128], index: 5, kind: input, shape index: {}]   ;;  %s1629_s6 = inlined_call_operand.vmem [shape: f32[1,128], index: 6, kind: input, shape index: {}]   ;;  %s1630_s7 = inlined_call_operand.vmem [shape: f32[1,128], index: 7, kind: input, shape index: {}]   ;;  %s1631_s8 = inlined_call_operand.vmem [shape: f32[1,128], index: 8, kind: input, shape index: {}]   ;;  %s1632_s9 = inlined_call_operand.vmem [shape: bf16[32,128], index: 9, kind: output, shape index: {}]  }
   0x1 LB: > { %s1163_s10 = sadd.s32 4294967295, %s1356_s30   ;;  %p1167_p0 = scmp.ge.s32.totalorder %s1356_s30, 1  ;;  %s1356_s30 = sphi %s1411_s30, %s19_s30  }
   0x2   : > { %p288_p1 = scmp.lt.s32.totalorder %s1356_s30, 3 }
   0x4   : > { %p289_p2 = pnand %p1167_p0, %p288_p1 }
   0x5   : > { %s1168_s11 = sshll.u32 (!%p289_p2), %s1163_s10, 1  ;;  %s1358_s16 = smov (!%p289_p2), 124  }
   0x6   : > { %292 = sbr.rel (%p289_p2) target bundleno = 739 (0x2e3), region = 56  ;;  %p325_p3 = scmp.lt.s32.totalorder (!%p289_p2), %s1168_s11, 3 }
   0x7   : > { %s1360_s19 = smov (!%p289_p2), 4  }
   0xb   : > { %v339_v0 = vlaneseq  ;;  %s1642_s11 = smov (!%p325_p3, %s1168_s11), 3  ;;  %v1174_v14 = vld.sshfl [vmem:[%s1624_s1] sm:$0x33 pattern:$0x76325410]  ;;  %vm439_vm4 = vcmask 1041408  }
   0xc   : > { %s1169_s12 = sshll.u32 %s1642_s11, 2  ;;  %v431_v17 = vcombine.high %v1174_v14, %v1174_v14  ;;  %v441_v18 = vsel %vm439_vm4, %v1174_v14, 0  ;;  %v1359_v19 = vmov 0   ;;  %vm432_vm5 = vcmask 31744   ;;  %v1309_v43 = vld [vmem:[%s1625_s2 + $0xb8] sm:$0xff]   ;;  %v1312_v46 = vld [vmem:[%s1625_s2 + $0xb0] sm:$0xff]  }
   0xd   : > { %v1419_v1 = vshrl.u32 %v339_v0, 7  ;;  %s328_s15 = scalar_lea.vmem %s1623_s0, %s1169_s12  ;;  %478 = vmatprep.mubr.bf16.mxu0 %v1359_v19  ;;  %549 = vmatprep.mubr.bf16.mxu1 %v1359_v19  ;;  %v1178_v22 = vld.sshfl [vmem:[%s1624_s1 + $0x4] sm:$0x33 pattern:$0x76325410]  ;;  %v1310_v44 = vld [vmem:[%s1625_s2 + $0x78] sm:$0xff]   ;;  %s334_s14 = scalar_lea.vmem %s1632_s9, %s1169_s12 }
   0xe   : > { %v337_v5 = vld [vmem:[%s328_s15] sm:$0xff]   ;;  %1175 = vmatprep.subr.msk.bf16.mxu0 %vm439_vm4, %v431_v17  ;;  %v507_v23 = vcombine.high %v1178_v22, %v1178_v22  ;;  %v512_v24 = vsel %vm439_vm4, %v1178_v22, 0  ;;  %v1183_v25 = vld.sshfl [vmem:[%s1624_s1 + $0x8] sm:$0x33 pattern:$0x76325410] }
   0xf   : > { %v341_v2 = vadd.s32 8, %v1419_v1  ;;  %v346_v3 = vand.u32 7, %v1419_v1  ;;  %v376_v8 = vunpack.c.l.bf16 %v337_v5  ;;  %v377_v9 = vunpack.c.h.bf16 %v337_v5  ;;  %415 = vrot.lane.b32.xlu1 %v337_v5, %s1358_s16  ;;  %461 = vmatpush1.bf16.msra.mxu0 %v441_v18  ;;  %v1311_v45 = vld [vmem:[%s1625_s2 + $0x38] sm:$0xff]   ;;  %v1313_v47 = vld [vmem:[%s1625_s2 + $0x70] sm:$0xff]   ;;  %v1315_v49 = vld [vmem:[%s1625_s2 + $0xa8] sm:$0xff]  }
  0x10   : > { %vm400_vm2 = vcmp.lt.s32.totalorder %v1419_v1, 7  ;;  %v582_v26 = vcombine.high %v1183_v25, %v1183_v25  ;;  %v587_v27 = vsel %vm439_vm4, %v1183_v25, 0  ;;  %1179 = vmatprep.subr.msk.bf16.mxu1 %vm439_vm4, %v507_v23  ;;  %vm388_vm6 = vcmp.lt.s32.totalorder %v1419_v1, 1  ;;  %v1314_v48 = vld [vmem:[%s1625_s2 + $0x30] sm:$0xff]   ;;  %v1316_v50 = vld [vmem:[%s1625_s2 + $0x68] sm:$0xff]   ;;  %v1318_v51 = vld [vmem:[%s1625_s2 + $0xa0] sm:$0xff]  }
  0x11   : > { %v353_v4 = vand.u32 7, %v341_v2  ;;  %vm1431_vm0 = vcmp.le.s32.totalorder %v346_v3, 6  ;;  %v398_v10 = vrot.slane %v376_v8, 1  ;;  %v399_v11 = vrot.slane %v377_v9, 1  ;;  %532 = vmatpush1.bf16.msra.mxu1 %v512_v24  ;;  %v1317_v53 = vld [vmem:[%s1625_s2 + $0x28] sm:$0xff]   ;;  %v1319_v54 = vld [vmem:[%s1625_s2 + $0x60] sm:$0xff]  }
  0x12   : > { %v1303_v21 = vpack.i.bf16 %v377_v9, %v376_v8  ;;  %1184 = vmatprep.subr.msk.bf16.mxu0 %vm439_vm4, %v582_v26  ;;  %vm1473_vm7 = vcmp.ge.s32.totalorder %v346_v3, 1  ;;  %1234 = vmatprep.subr.bf16.mxu1 %v1310_v44  ;;  %v1321_v55 = vld [vmem:[%s1625_s2 + $0x98] sm:$0xff]   ;;  %v1320_v57 = vld [vmem:[%s1625_s2 + $0x20] sm:$0xff]   ;;  %v1324_v59 = vld [vmem:[%s1625_s2 + $0x90] sm:$0xff]  }
  0x13   : > { %vm1435_vm1 = vcmp.le.s32.totalorder %v353_v4, 6  ;;  %v401_v12 = vsel %vm400_vm2, %v398_v10, %v399_v11  ;;  %v402_v13 = vsel %vm400_vm2, %v399_v11, %v398_v10  ;;  %vm1477_vm8 = vcmp.ge.s32.totalorder %v353_v4, 1  ;;  %v1322_v58 = vld [vmem:[%s1625_s2 + $0x58] sm:$0xff]   ;;  %v1325_v63 = vld [vmem:[%s1625_s2 + $0x50] sm:$0xff]   ;;  %v1327_v3 = vld [vmem:[%s1625_s2 + $0x88] sm:$0xff]  }
  0x14   : > { %vm1218_vm3 = vmpackc.low %vm1435_vm1, %vm1431_vm0  ;;  %v407_v15 = vsel %vm1431_vm0, %v401_v12, 0.0  ;;  %v408_v16 = vsel %vm1435_vm1, %v402_v13, 0.0  ;;  %1180 = vmatmul.mubr.msk.bf16.vlgmr.msra.gmra.mxu1 %vm432_vm5, %v337_v5  ;;  %v1323_v62 = vld [vmem:[%s1625_s2 + $0x18] sm:$0xff]   ;;  %v1328_v8 = vld [vmem:[%s1625_s2 + $0x48] sm:$0xff]  }
  0x15   : > { %v409_v20 = vpack.c.bf16 %v408_v16, %v407_v15  ;;  %559 = vmatprep.mubr.bf16.mxu1 %v1359_v19  ;;  %1235 = vmatpush3.bf16.msra.mxu1 %v1311_v45  ;;  %v1330_v12 = vld [vmem:[%s1625_s2 + $0x80] sm:$0xff]   ;;  %v1329_v14 = vld [vmem:[%s1625_s2 + $0x8] sm:$0xff]   ;;  %vm1215_vm9 = vmpackc.low %vm1477_vm8, %vm1473_vm7 }
  0x16   : > { %1236 = vmatprep.subr.bf16.mxu1 %v1313_v47  ;;  %v1331_v15 = vld [vmem:[%s1625_s2 + $0x40] sm:$0xff]  }
  0x17   : > { %418 = vrot.lane.b32.xlu0 %v409_v20, %s1360_s19  ;;  %v1332_v20 = vld [vmem:[%s1625_s2] sm:$0xff]  }
  0x18   : > { %v1189_v24 = vld [vmem:[%s1626_s3] ss:$0 sm:$0xff] }
  0x19   : > { %1237 = vmatpush3.bf16.msra.mxu1 %v1314_v48  ;;  %v1187_v33 = vld [vmem:[%s1630_s7] ss:$0 sm:$0xff] }
  0x1a   : > { %1238 = vmatprep.subr.bf16.mxu1 %v1316_v50  ;;  %v1221_v6 = vld [vmem:[%s1628_s5] ss:$0 sm:$0xff] }
  0x1b   : > { %1304 = vrot.lane.b32.xlu0 %v1303_v21, %s1358_s16 }
  0x1d   : > { %1239 = vmatpush3.bf16.msra.mxu1 %v1317_v53 }
  0x1e   : > { %1240 = vmatprep.subr.bf16.mxu1 %v1319_v54 }
  0x21   : > { %1241 = vmatpush3.bf16.msra.mxu1 %v1320_v57 }
  0x22   : > { %1242 = vmatprep.subr.bf16.mxu1 %v1322_v58 }
  0x25   : > { %1243 = vmatpush3.bf16.msra.mxu1 %v1323_v62 }
  0x26   : > { %1244 = vmatprep.subr.bf16.mxu1 %v1325_v63 }
  0x81   : > { %v416_v28 = vpop.permute.xlu1 %415 }
  0x82   : > { %1181 = vmatmul.mubr.msk.bf16.gmra.mxu1 %vm432_vm5, %v416_v28 }
  0x89   : > { %v419_v29 = vpop.permute.xlu0 %418 }
  0x8a   : > { %572 = vrot.lane.b32.xlu1 %v419_v29, %s1358_s16 }
  0x8d   : > { %v1305_v30 = vpop.permute.xlu0 %1304 }
  0x8e   : > { %v1307_v31 = vunpack.i.h.bf16 %v1305_v30  ;;  %v1306_v32 = vunpack.i.l.bf16 %v1305_v30 }
  0x90   : > { %v387_v35 = vrot.slane %v1307_v31, 7  ;;  %v386_v36 = vrot.slane %v1306_v32, 7 }
  0x92   : > { %v389_v37 = vsel %vm388_vm6, %v386_v36, %v387_v35  ;;  %v390_v38 = vsel %vm388_vm6, %v387_v35, %v386_v36 }
  0x93   : > { %v395_v39 = vsel %vm1473_vm7, %v390_v38, 0.0  ;;  %v396_v40 = vsel %vm1477_vm8, %v389_v37, 0.0 }
  0x94   : > { %v397_v41 = vpack.c.bf16 %v396_v40, %v395_v39 }
  0x96   : > { %1176 = vmatmul.mubr.msk.bf16.vlgmr.msra.gmra.mxu0 %vm432_vm5, %v397_v41 }
  0x97   : > { %488 = vmatprep.mubr.bf16.mxu0 %v1359_v19  ;;  %607 = vmatpush1.bf16.msra.mxu0 %v587_v27 }
  0x98   : > { %1272 = vmatprep.subr.bf16.mxu0 %v1309_v43 }
  0x9e   : > { %1177 = vmatmul.mubr.msk.bf16.gmra.mxu0 %vm432_vm5, %v337_v5  ;;  %v1326_v5 = vld [vmem:[%s1625_s2 + $0x10] sm:$0xff]  }
  0x9f   : > { %624 = vmatprep.mubr.bf16.mxu0 %v1359_v19  ;;  %1245 = vmatpush3.bf16.msra.mxu1 %v1326_v5 }
  0xa0   : > { %1246 = vmatprep.subr.bf16.mxu1 %v1328_v8 }
  0xa3   : > { %1247 = vmatpush3.bf16.msra.mxu1 %v1329_v14 }
  0xa4   : > { %1248 = vmatprep.subr.bf16.mxu1 %v1331_v15 }
  0xa6   : > { %1185 = vmatmul.mubr.msk.bf16.vlgmr.msra.gmra.mxu0 %vm432_vm5, %v416_v28  ;;  %v1190_v28 = vld [vmem:[%s1627_s4] ss:$0 sm:$0xff] }
  0xa7   : > { %634 = vmatprep.mubr.bf16.mxu0 %v1359_v19  ;;  %1273 = vmatpush3.bf16.msra.mxu0 %v1309_v43 }
  0xa8   : > { %1274 = vmatprep.subr.bf16.mxu0 %v1312_v46  ;;  %1249 = vmatpush3.bf16.msra.mxu1 %v1332_v20 }
  0xab   : > { %1275 = vmatpush3.bf16.msra.mxu0 %v1312_v46 }
  0xac   : > { %1276 = vmatprep.subr.bf16.mxu0 %v1315_v49 }
  0xaf   : > { %1277 = vmatpush3.bf16.msra.mxu0 %v1315_v49 }
  0xb0   : > { %1278 = vmatprep.subr.bf16.mxu0 %v1318_v51 }
  0xb3   : > { %1279 = vmatpush3.bf16.msra.mxu0 %v1318_v51 }
  0xb4   : > { %1280 = vmatprep.subr.bf16.mxu0 %v1321_v55 }
  0xb7   : > { %1281 = vmatpush3.bf16.msra.mxu0 %v1321_v55 }
  0xb8   : > { %1282 = vmatprep.subr.bf16.mxu0 %v1324_v59 }
  0xbb   : > { %1283 = vmatpush3.bf16.msra.mxu0 %v1324_v59 }
  0xbc   : > { %1284 = vmatprep.subr.bf16.mxu0 %v1327_v3 }
  0xbf   : > { %1285 = vmatpush3.bf16.msra.mxu0 %v1327_v3 }
  0xc0   : > { %1286 = vmatprep.subr.bf16.mxu0 %v1330_v12 }
  0xc3   : > { %1287 = vmatpush3.bf16.msra.mxu0 %v1330_v12 }
  0xd4   : > { %v551_v52 = vpop.f32.mrf.mxu1 }
  0xd6   : > { %v553_v56 = vpop.f32.mrf.mxu1 }
  0xd8   : > { %v555_v61 = vpop.f32.mrf.mxu1 }
  0xda   : > { %v557_v2 = vpop.f32.mrf.mxu1 }
  0xfc   : > { %v573_v42 = vpop.permute.xlu1 %572 }
  0xfd   : > { %1186 = vmatmul.mubr.msk.bf16.gmra.mxu0 %vm432_vm5, %v573_v42 }
 0x142   : > { %v1553_v10 = vpop.f32.mrf.mxu1 }
 0x144   : > { %v563_v17 = vpop.f32.mrf.mxu1 }
 0x156   : > { %v480_v60 = vpop.f32.mrf.mxu0 }
 0x157   : > { %v552_v21 = vadd.f32 %v551_v52, %v480_v60 }
 0x158   : > { %v482_v0 = vpop.f32.mrf.mxu0 }
 0x159   : > { %v554_v23 = vadd.f32 %v553_v56, %v482_v0 }
 0x15a   : > { %v484_v4 = vpop.f32.mrf.mxu0 }
 0x15b   : > { %v556_v27 = vadd.f32 %v555_v61, %v484_v4  ;;  %v565_v4 = vpop.f32.mrf.mxu1 }
 0x15c   : > { %v486_v9 = vpop.f32.mrf.mxu0 }
 0x15d   : > { %v1555_v11 = vadd.f32 %v557_v2, %v486_v9 }
 0x15e   : > { %v490_v13 = vpop.f32.mrf.mxu0 }
 0x15f   : > { %v562_v0 = vadd.f32 %v1553_v10, %v490_v13 }
 0x160   : > { %v492_v16 = vpop.f32.mrf.mxu0 }
 0x161   : > { %v564_v18 = vadd.f32 %v563_v17, %v492_v16 }
 0x162   : > { %v494_v19 = vpop.f32.mrf.mxu0 }
 0x163   : > { %v566_v8 = vadd.f32 %v565_v4, %v494_v19 }
 0x164   : > { %v1569_v22 = vpop.f32.mrf.mxu0 }
 0x166   : > { %v626_v25 = vpop.f32.mrf.mxu0 }
 0x167   : > { %v645_v26 = vadd.f32 %v626_v25, %v552_v21 }
 0x168   : > { %v628_v29 = vpop.f32.mrf.mxu0 }
 0x169   : > { %v679_v30 = vmul.f32 %v1189_v24, %v645_v26  ;;  %v1577_v31 = vadd.f32 %v628_v29, %v554_v23 }
 0x16a   : > { %v630_v32 = vpop.f32.mrf.mxu0 }
 0x16b   : > { %v689_v35 = vadd.f32 %v1190_v28, %v679_v30  ;;  %v647_v36 = vadd.f32 %v630_v32, %v556_v27 }
 0x16c   : > { %v632_v63 = vpop.f32.mrf.mxu0 }
 0x16d   : > { %v697_v37 = vmul.f32 %v689_v35, %v689_v35  ;;  %v680_v38 = vmul.f32 %v1189_v24, %v647_v36  ;;  %v693_v49 = vmul.f32 0.5, %v689_v35  ;;  %v648_v7 = vadd.f32 %v632_v63, %v1555_v11 }
 0x16f   : > { %v701_v39 = vmul.f32 %v697_v37, %v689_v35  ;;  %v690_v40 = vadd.f32 %v1190_v28, %v680_v38 }
 0x171   : > { %v705_v41 = vmul.f32 0.044715, %v701_v39  ;;  %v698_v42 = vmul.f32 %v690_v40, %v690_v40  ;;  %v694_v52 = vmul.f32 0.5, %v690_v40 }
 0x173   : > { %v702_v43 = vmul.f32 %v698_v42, %v690_v40  ;;  %v709_v44 = vadd.f32 %v705_v41, %v689_v35 }
 0x175   : > { %v706_v45 = vmul.f32 0.044715, %v702_v43  ;;  %v713_v46 = vmul.f32 0.7978846, %v709_v44 }
 0x177   : > { %v710_v47 = vadd.f32 %v706_v45, %v690_v40  ;;  %1334 = vtanh.f32 %v713_v46  ;;  %v567_v46 = vpop.f32.mrf.mxu1 }
 0x179   : > { %v714_v48 = vmul.f32 0.7978846, %v710_v47 }
 0x17b   : > { %1336 = vtanh.f32 %v714_v48 }
 0x184   : > { %v1335_v50 = vpop.eup %1334 }
 0x185   : > { %v721_v51 = vadd.f32 1.0, %v1335_v50 }
 0x187   : > { %v725_v53 = vmul.f32 %v721_v51, %v693_v49 }
 0x188   : > { %v1337_v54 = vpop.eup %1336 }
 0x189   : > { %v722_v55 = vadd.f32 1.0, %v1337_v54  ;;  %v738_v57 = vrot.slane %v725_v53, 1  ;;  %v1188_v54 = vld [vmem:[%s1631_s8] ss:$0 sm:$0xff] }
 0x18b   : > { %v726_v56 = vmul.f32 %v722_v55, %v694_v52  ;;  %v659_v52 = vmul.f32 %v1187_v33, %v1577_v31  ;;  %v1222_v55 = vld [vmem:[%s1629_s6] ss:$0 sm:$0xff] }
 0x18d   : > { %v729_v58 = vpack.c.bf16 %v726_v56, %v725_v53  ;;  %v739_v59 = vrot.slane %v726_v56, 1 }
 0x18f   : > { %v740_v60 = vsel %vm400_vm2, %v738_v57, %v739_v59  ;;  %v741_v61 = vsel %vm400_vm2, %v739_v59, %v738_v57  ;;  %969 = vmatprep.mubr.bf16.mxu1 %v729_v58 }
 0x190   : > { %v1219_v62 = vpack.c.bf16 %v741_v61, %v740_v60  ;;  %v669_v61 = vadd.f32 %v1188_v54, %v659_v52 }
 0x1bd   : > { %v636_v2 = vpop.f32.mrf.mxu0 }
 0x1be   : > { %v649_v3 = vadd.f32 %v636_v2, %v562_v0 }
 0x1bf   : > { %v638_v5 = vpop.f32.mrf.mxu0 }
 0x1c0   : > { %v681_v9 = vmul.f32 %v1189_v24, %v649_v3  ;;  %v1584_v12 = vadd.f32 %v638_v5, %v564_v18  ;;  %v568_v5 = vadd.f32 %v567_v46, %v1569_v22 }
 0x1c1   : > { %v640_v14 = vpop.f32.mrf.mxu0 }
 0x1c2   : > { %v691_v15 = vadd.f32 %v1190_v28, %v681_v9  ;;  %v651_v16 = vadd.f32 %v640_v14, %v566_v8  ;;  %v661_v9 = vmul.f32 %v1187_v33, %v1584_v12 }
 0x1c3   : > { %v642_v45 = vpop.f32.mrf.mxu0 }
 0x1c4   : > { %v699_v17 = vmul.f32 %v691_v15, %v691_v15  ;;  %v682_v20 = vmul.f32 %v1189_v24, %v651_v16  ;;  %v695_v35 = vmul.f32 0.5, %v691_v15 }
 0x1c6   : > { %v703_v21 = vmul.f32 %v699_v17, %v691_v15  ;;  %v692_v23 = vadd.f32 %v1190_v28, %v682_v20  ;;  %v652_v17 = vadd.f32 %v642_v45, %v568_v5 }
 0x1c8   : > { %v707_v25 = vmul.f32 0.044715, %v703_v21  ;;  %v700_v26 = vmul.f32 %v692_v23, %v692_v23  ;;  %v696_v37 = vmul.f32 0.5, %v692_v23 }
 0x1ca   : > { %v704_v27 = vmul.f32 %v700_v26, %v692_v23  ;;  %v711_v29 = vadd.f32 %v707_v25, %v691_v15 }
 0x1cc   : > { %v708_v10 = vmul.f32 0.044715, %v704_v27  ;;  %v715_v13 = vmul.f32 0.7978846, %v711_v29  ;;  %v671_v27 = vadd.f32 %v1188_v54, %v661_v9 }
 0x1ce   : > { %v712_v30 = vadd.f32 %v708_v10, %v692_v23  ;;  %1338 = vtanh.f32 %v715_v13 }
 0x1d0   : > { %v716_v32 = vmul.f32 0.7978846, %v712_v30  ;;  %v662_v30 = vmul.f32 %v1187_v33, %v652_v17 }
 0x1d2   : > { %1340 = vtanh.f32 %v716_v32 }
 0x1db   : > { %v1339_v19 = vpop.eup %1338 }
 0x1dc   : > { %v723_v18 = vadd.f32 1.0, %v1339_v19 }
 0x1de   : > { %v727_v39 = vmul.f32 %v723_v18, %v695_v35 }
 0x1df   : > { %v1341_v36 = vpop.eup %1340 }
 0x1e0   : > { %v724_v38 = vadd.f32 1.0, %v1341_v36  ;;  %v731_v28 = vrot.slane %v727_v39, 7 }
 0x1e2   : > { %v728_v24 = vmul.f32 %v724_v38, %v696_v37  ;;  %v672_v37 = vadd.f32 %v1188_v54, %v662_v30 }
 0x1e4   : > { %v730_v40 = vpack.c.bf16 %v728_v24, %v727_v39  ;;  %v732_v41 = vrot.slane %v728_v24, 7 }
 0x1e6   : > { %v733_v42 = vsel %vm388_vm6, %v731_v28, %v732_v41  ;;  %v734_v43 = vsel %vm388_vm6, %v732_v41, %v731_v28  ;;  %1288 = vmatprep.mubr.bf16.mxu0 %v730_v40 }
 0x1e7   : > { %v1216_v44 = vpack.c.bf16 %v733_v42, %v734_v43  ;;  %1289 = vmatmul.mubr.msk.bf16.vlgmr.msra.gmra.mxu0 %vm1218_vm3, %v1219_v62 }
 0x1e9   : > { %1217 = vmatmul.mubr.msk.bf16.vlgmr.msra.gmra.mxu1 %vm1215_vm9, %v1216_v44 }
 0x1ea   : > { %977 = vmatprep.mubr.bf16.mxu1 %v730_v40 }
 0x1f1   : > { %978 = vmatmul.mubr.bf16.gmra.mxu1 %v729_v58  ;;  %v660_v58 = vmul.f32 %v1187_v33, %v648_v7 }
 0x1f3   : > { %v670_v4 = vadd.f32 %v1188_v54, %v660_v58 }
 0x2a7   : > { %v1290_v1 = vpop.f32.mrf.mxu0 }
 0x2a9   : > { %v1250_v47 = vpop.f32.mrf.mxu1  ;;  %v1020_v48 = vpop.f32.mrf.mxu0 }
 0x2ab   : > { %v1251_v34 = vpop.f32.mrf.mxu1  ;;  %v1291_v50 = vpop.f32.mrf.mxu0 }
 0x2ac   : > { %v1252_v49 = vadd.f32 %v1251_v34, %v1250_v47 }
 0x2ad   : > { %v1253_v51 = vpop.f32.mrf.mxu1  ;;  %v1023_v59 = vpop.f32.mrf.mxu0 }
 0x2ae   : > { %v1021_v53 = vadd.f32 %v1252_v49, %v1020_v48 }
 0x2af   : > { %v1254_v56 = vpop.f32.mrf.mxu1 }
 0x2b0   : > { %v1041_v57 = vmul.f32 %v1221_v6, %v1021_v53  ;;  %v1255_v11 = vadd.f32 %v1254_v56, %v1253_v51 }
 0x2b1   : > { %v1256_v60 = vpop.f32.mrf.mxu1 }
 0x2b2   : > { %v1051_v62 = vadd.f32 %v1222_v55, %v1041_v57  ;;  %v1024_v63 = vadd.f32 %v1255_v11, %v1023_v59 }
 0x2b3   : > { %v1257_v0 = vpop.f32.mrf.mxu1 }
 0x2b4   : > { %v1055_v31 = vadd.f32 %v1051_v62, %v669_v61  ;;  %v1042_v2 = vmul.f32 %v1221_v6, %v1024_v63  ;;  %v1258_v3 = vadd.f32 %v1257_v0, %v1256_v60 }
 0x2b5   : > { %v1259_v8 = vpop.f32.mrf.mxu1 }
 0x2b6   : > { %v1063_v14 = vmul.f32 %v1055_v31, %v1055_v31  ;;  %v1052_v15 = vadd.f32 %v1222_v55, %v1042_v2  ;;  %v1029_v16 = vadd.f32 %v1290_v1, %v1258_v3 }
 0x2b7   : > { %v1260_v20 = vpop.f32.mrf.mxu1 }
 0x2b8   : > { %v1067_v21 = vmul.f32 %v1063_v14, %v1055_v31  ;;  %v1056_v23 = vadd.f32 %v1052_v15, %v670_v4  ;;  %v1043_v25 = vmul.f32 %v1221_v6, %v1029_v16  ;;  %v1261_v26 = vadd.f32 %v1260_v20, %v1259_v8 }
 0x2ba   : > { %v1071_v29 = vmul.f32 0.044715, %v1067_v21  ;;  %v1064_v10 = vmul.f32 %v1056_v23, %v1056_v23  ;;  %v1053_v13 = vadd.f32 %v1222_v55, %v1043_v25  ;;  %v1032_v32 = vadd.f32 %v1291_v50, %v1261_v26 }
 0x2bb   : > { %v1060_v57 = vmul.f32 0.5, %v1056_v23 }
 0x2bc   : > { %v1075_v19 = vadd.f32 %v1071_v29, %v1055_v31  ;;  %v1068_v22 = vmul.f32 %v1064_v10, %v1056_v23  ;;  %v1057_v18 = vadd.f32 %v1053_v13, %v671_v27  ;;  %v1044_v35 = vmul.f32 %v1221_v6, %v1032_v32 }
 0x2bd   : > { %v1059_v6 = vmul.f32 0.5, %v1055_v31 }
 0x2be   : > { %v1072_v12 = vmul.f32 0.044715, %v1068_v22  ;;  %v1065_v36 = vmul.f32 %v1057_v18, %v1057_v18  ;;  %v1054_v38 = vadd.f32 %v1222_v55, %v1044_v35  ;;  %v1079_v39 = vmul.f32 0.7978846, %v1075_v19 }
 0x2bf   : > { %v1061_v50 = vmul.f32 0.5, %v1057_v18 }
 0x2c0   : > { %v1069_v24 = vmul.f32 %v1065_v36, %v1057_v18  ;;  %v1076_v40 = vadd.f32 %v1072_v12, %v1056_v23  ;;  %v1058_v28 = vadd.f32 %v1054_v38, %v672_v37  ;;  %1342 = vtanh.f32 %v1079_v39 }
 0x2c2   : > { %v1073_v41 = vmul.f32 0.044715, %v1069_v24  ;;  %v1066_v42 = vmul.f32 %v1058_v28, %v1058_v28  ;;  %v1080_v44 = vmul.f32 0.7978846, %v1076_v40  ;;  %v1062_v11 = vmul.f32 0.5, %v1058_v28 }
 0x2c4   : > { %v1077_v43 = vadd.f32 %v1073_v41, %v1057_v18  ;;  %v1070_v45 = vmul.f32 %v1066_v42, %v1058_v28 }
 0x2c6   : > { %v1081_v46 = vmul.f32 0.7978846, %v1077_v43  ;;  %v1074_v1 = vmul.f32 0.044715, %v1070_v45 }
 0x2c8   : > { %1344 = vtanh.f32 %v1081_v46  ;;  %v1078_v47 = vadd.f32 %v1074_v1, %v1058_v28 }
 0x2c9   : > { %1346 = vtanh.f32 %v1080_v44 }
 0x2ca   : > { %v1082_v48 = vmul.f32 0.7978846, %v1078_v47 }
 0x2cc   : > { %1348 = vtanh.f32 %v1082_v48 }
 0x2cd   : > { %v1343_v33 = vpop.eup %1342 }
 0x2ce   : > { %v1087_v34 = vadd.f32 1.0, %v1343_v33 }
 0x2d0   : > { %v1091_v52 = vmul.f32 %v1087_v34, %v1059_v6 }
 0x2d5   : > { %v1345_v49 = vpop.eup %1344 }
 0x2d6   : > { %v1347_v7 = vpop.eup %1346  ;;  %v1089_v51 = vadd.f32 1.0, %v1345_v49 }
 0x2d7   : > { %v1088_v54 = vadd.f32 1.0, %v1347_v7 }
 0x2d8   : > { %v1093_v53 = vmul.f32 %v1089_v51, %v1061_v50 }
 0x2d9   : > { %v1349_v55 = vpop.eup %1348  ;;  %v1092_v59 = vmul.f32 %v1088_v54, %v1060_v57 }
 0x2da   : > { %v1095_v56 = vmax.f32 %v1091_v52, %v1093_v53  ;;  %v1090_v58 = vadd.f32 1.0, %v1349_v55 }
 0x2dc   : > { %v1094_v60 = vmul.f32 %v1090_v58, %v1062_v11 }
 0x2de   : > { %v1096_v61 = vmax.f32 %v1092_v59, %v1094_v60 }
 0x2e0   : > { %v1232_v62 = vpack.c.bf16 %v1096_v61, %v1095_v56 }
 0x2e2   : > { %1233 = vst [vmem:[%s334_s14] sm:$0xff] %v1232_v62  }
 0x2e3 PF: > { %s19_s30 = sadd.s32 1, %s1356_s30  }
 0x2e4   : > { %p16_p4 = scmp.ge.s32.totalorder %s19_s30, 4  }
 0x2e6   :  { %18 = sbr.rel (!%p16_p4) target bundleno = 1 (0x1), region = 88 }

</bundles_post_ra>
